<compile_context>
chip_gen: v5e
topology: v5e:2x2
jax: 0.10.0
libtpu: 0.0.40
codegen_flags: <defaults>
</compile_context>

<pallas_src>
import functools

import jax
import jax.numpy as jnp
from jax.experimental import pallas as pl
from jax.experimental.pallas import tpu as pltpu


def _pv_kernel(
    # inputs
    x_ref,        # (B, in_size)   f32   observation for this timestep
    state0_ref,   # (B, 2H)        f32   initial [h || c]  (read only at t == 0)
    w_ref,        # (rows, lanes)  bf16  packed weight/bias slab (resident across T)
    # outputs
    head_ref,     # (B, head_w)    f32   logits || value  (lane-dense, >=128 lanes)
    state_ref,    # (B, 2H)        f32   running [h || c]; resident across the T grid
    *, in_size, hidden, offs, head_w,
):
    H = hidden
    o_w1, o_wlstm, o_wac1, o_wac2, o_whead, o_bias = offs

    # Initialize the resident LSTM state from the packed input on the first grid step.
    @pl.when(pl.program_id(0) == 0)
    def _():
        state_ref[...] = state0_ref[...]

    x = x_ref[...].astype(jnp.bfloat16)          # MXU operands in bf16
    hx = state_ref[:, 0:H]                       # f32, previous hidden
    cx = state_ref[:, H:2 * H]                   # f32, previous cell

    # One aligned load of the 16-row bias block, then static value slices.
    biases = w_ref[o_bias:o_bias + 16, :].astype(jnp.float32)
    b1 = biases[0:1, 0:H]
    b_lstm = biases[1:2, 0:4 * H]                # b_ih + b_hh pre-summed
    b_ac1 = biases[2:3, 0:2 * H]
    b_ac2 = biases[3:4, 0:2 * H]
    b_head = biases[4:5, 0:head_w]

    # fc1 (the 1/5 input scale is pre-folded into the weight): h = relu(x @ W1 + b1)
    w1 = w_ref[o_w1:o_w1 + in_size, 0:H]
    h = jnp.maximum(jnp.dot(x, w1, preferred_element_type=jnp.float32) + b1, 0.0)

    # Fused single-step LSTM: two accumulated dots on static sublane slices of the slab
    # (no in-kernel lane concat of [h | hx]).
    gates = (
        jnp.dot(h.astype(jnp.bfloat16),
                w_ref[o_wlstm:o_wlstm + H, 0:4 * H],
                preferred_element_type=jnp.float32)
        + jnp.dot(hx.astype(jnp.bfloat16),
                  w_ref[o_wlstm + H:o_wlstm + 2 * H, 0:4 * H],
                  preferred_element_type=jnp.float32)
        + b_lstm)

    # Elementwise / activation math stays f32 (v5e VPU/EUP have no bf16).
    sig = jax.nn.sigmoid(gates)
    th = jnp.tanh(gates)
    i_g = sig[:, 0 * H:1 * H]
    f_g = sig[:, 1 * H:2 * H]
    g_g = th[:, 2 * H:3 * H]
    o_g = sig[:, 3 * H:4 * H]
    c_new = f_g * cx + i_g * g_g
    h_new = o_g * jnp.tanh(c_new)

    # Direct slice stores straight from the compute vregs (no lane concat).
    state_ref[:, 0:H] = h_new
    state_ref[:, H:2 * H] = c_new

    # Fused actor/critic towers: 3 matmuls (concatenated / block-diagonal weights).
    hb = h_new.astype(jnp.bfloat16)
    t1 = jnp.maximum(
        jnp.dot(hb, w_ref[o_wac1:o_wac1 + H, 0:2 * H],
                preferred_element_type=jnp.float32) + b_ac1, 0.0)
    t2 = jnp.maximum(
        jnp.dot(t1.astype(jnp.bfloat16), w_ref[o_wac2:o_wac2 + 2 * H, 0:2 * H],
                preferred_element_type=jnp.float32) + b_ac2, 0.0)
    # Lane-dense head output: unmasked full-vreg stores; lanes beyond A+1 are exact 0.
    head_ref[...] = (
        jnp.dot(t2.astype(jnp.bfloat16), w_ref[o_whead:o_whead + 2 * H, 0:head_w],
                preferred_element_type=jnp.float32) + b_head)


def init_params(key, input_size, num_actions, hidden_size):
    """Deterministic PyTorch-style uniform(-1/sqrt(fan_in), 1/sqrt(fan_in)) init.

    Linear weights stored PyTorch-style as (out, in); LSTM weights as (4H, H)."""
    def lin(k, out_f, in_f):
        kw, kb = jax.random.split(k)
        bound = 1.0 / jnp.sqrt(jnp.float32(in_f))
        w = jax.random.uniform(kw, (out_f, in_f), jnp.float32, -bound, bound)
        b = jax.random.uniform(kb, (out_f,), jnp.float32, -bound, bound)
        return w, b

    ks = jax.random.split(key, 10)
    H = hidden_size
    p = {}
    p["fc1_w"], p["fc1_b"] = lin(ks[0], H, input_size)
    p["w_ih"], p["b_ih"] = lin(ks[1], 4 * H, H)
    p["w_hh"], p["b_hh"] = lin(ks[2], 4 * H, H)
    p["a1_w"], p["a1_b"] = lin(ks[3], H, H)
    p["a2_w"], p["a2_b"] = lin(ks[4], H, H)
    p["pol_w"], p["pol_b"] = lin(ks[5], num_actions, H)
    p["c1_w"], p["c1_b"] = lin(ks[6], H, H)
    p["c2_w"], p["c2_b"] = lin(ks[7], H, H)
    p["val_w"], p["val_b"] = lin(ks[8], 1, H)
    return p


def prepare_params(params):
    """One-time parameter transform: transpose, fuse, and pack everything into ONE
    bf16 (rows, >=128)-lane slab so the kernel needs a single resident weight DMA.

    Row blocks (each 16-row aligned for bf16 sublane tiling; last block = 5 bias rows):
      W1=(fc1_w.T)/5 | [W_ih;W_hh].T | [a1|c1].T | blkdiag(a2,c2).T | blkdiag(pol,val).T | biases
    """
    H = params["a1_w"].shape[0]
    IN = params["fc1_w"].shape[1]
    A = params["pol_w"].shape[0]

    def rnd16(n):
        return (n + 15) // 16 * 16

    def rnd128(n):
        return (n + 127) // 128 * 128

    lanes = rnd128(max(4 * H, A + 1, 128))
    head_w = max(128, rnd128(A + 1))            # lane-dense head width

    zHH = jnp.zeros((H, H), jnp.float32)
    w1 = params["fc1_w"].T / 5.0                                          # (IN, H)
    w_lstm = jnp.concatenate([params["w_ih"].T, params["w_hh"].T], 0)     # (2H, 4H)
    w_ac1 = jnp.concatenate([params["a1_w"].T, params["c1_w"].T], 1)      # (H, 2H)
    w_ac2 = jnp.block([[params["a2_w"].T, zHH],
                       [zHH, params["c2_w"].T]])                          # (2H, 2H)
    w_head = jnp.block([[params["pol_w"].T, jnp.zeros((H, 1), jnp.float32)],
                        [jnp.zeros((H, A), jnp.float32), params["val_w"].T]])  # (2H, A+1)

    b1 = params["fc1_b"]
    b_lstm = params["b_ih"] + params["b_hh"]
    b_ac1 = jnp.concatenate([params["a1_b"], params["c1_b"]])
    b_ac2 = jnp.concatenate([params["a2_b"], params["c2_b"]])
    b_head = jnp.concatenate([params["pol_b"], params["val_b"]])

    mats = [w1, w_lstm, w_ac1, w_ac2, w_head]
    offs = []
    rows = 0
    for m in mats:
        offs.append(rows)
        rows += rnd16(m.shape[0])
    o_bias = rows
    rows += 16                                   # 5 bias rows + pad (16-row aligned block)

    slab = jnp.zeros((rows, lanes), jnp.float32)
    for m, o in zip(mats, offs):
        slab = slab.at[o:o + m.shape[0], 0:m.shape[1]].set(m.astype(jnp.float32))
    for k, b in enumerate([b1, b_lstm, b_ac1, b_ac2, b_head]):
        slab = slab.at[o_bias + k, 0:b.shape[0]].set(b.astype(jnp.float32))

    return {
        "slab": slab.astype(jnp.bfloat16),       # bf16 MXU operands; halves weight DMA
        "in_size": int(IN),
        "hidden": int(H),
        "actions": int(A),
        "head_w": int(head_w),
        "offs": tuple(int(o) for o in offs) + (int(o_bias),),
    }


def _pallas_rollout(slab, xs, state0, *, in_size, hidden, offs, head_w):
    """Run T back-to-back timesteps in one pallas_call (grid over T, state resident)."""
    T, B, _ = xs.shape
    H = hidden
    kernel = functools.partial(
        _pv_kernel, in_size=in_size, hidden=hidden, offs=offs, head_w=head_w)
    return pl.pallas_call(
        kernel,
        grid=(T,),
        out_shape=(
            jax.ShapeDtypeStruct((T, B, head_w), jnp.float32),   # logits || value per step
            jax.ShapeDtypeStruct((B, 2 * H), jnp.float32),       # final [h || c]
        ),
        in_specs=[
            pl.BlockSpec((None, B, in_size), lambda t: (t, 0, 0)),   # stream obs over T
            pl.BlockSpec((B, 2 * H), lambda t: (0, 0)),              # initial state
            pl.BlockSpec(slab.shape, lambda t: (0, 0)),              # slab DMA'd once, resident
        ],
        out_specs=(
            pl.BlockSpec((None, B, head_w), lambda t: (t, 0, 0)),
            pl.BlockSpec((B, 2 * H), lambda t: (0, 0)),              # state stays in VMEM over T
        ),
        compiler_params=pltpu.CompilerParams(
            dimension_semantics=("arbitrary",)),                     # recurrent over T
    )(xs, state0, slab)


@functools.partial(jax.jit,
                   static_argnames=("in_size", "hidden", "actions", "offs", "head_w"))
def _forward_impl(slab, x, hx, cx, *, in_size, hidden, actions, offs, head_w):
    H, A = hidden, actions
    state0 = jnp.concatenate([hx[0], cx[0]], axis=1)                 # (B, 2H)
    heads, state = _pallas_rollout(slab, x[None], state0, in_size=in_size,
                                   hidden=H, offs=offs, head_w=head_w)
    logits = heads[0, :, :A]
    value = heads[0, :, A]
    return logits, value, (state[:, :H][None], state[:, H:][None])


@functools.partial(jax.jit,
                   static_argnames=("in_size", "hidden", "actions", "offs", "head_w"))
def _rollout_impl(slab, xs, hx, cx, *, in_size, hidden, actions, offs, head_w):
    H, A = hidden, actions
    state0 = jnp.concatenate([hx[0], cx[0]], axis=1)                 # (B, 2H)
    heads, state = _pallas_rollout(slab, xs, state0, in_size=in_size,
                                   hidden=H, offs=offs, head_w=head_w)
    logits = heads[:, :, :A]
    values = heads[:, :, A]
    return logits, values, (state[:, :H][None], state[:, H:][None])


def policy_value_forward(prepped, x, hx, cx):
    """Single step. x: (B, input_size); hx, cx: (1, B, H) (PyTorch LSTM convention)."""
    return _forward_impl(
        prepped["slab"], x.astype(jnp.float32), hx, cx,
        in_size=prepped["in_size"], hidden=prepped["hidden"],
        actions=prepped["actions"], offs=prepped["offs"], head_w=prepped["head_w"])


def policy_value_rollout(prepped, xs, hx, cx):
    """T back-to-back steps in ONE kernel launch; LSTM state never leaves VMEM.
    xs: (T, B, input_size).  Returns (logits (T,B,A), values (T,B), (hx_T, cx_T))."""
    return _rollout_impl(
        prepped["slab"], xs.astype(jnp.float32), hx, cx,
        in_size=prepped["in_size"], hidden=prepped["hidden"],
        actions=prepped["actions"], offs=prepped["offs"], head_w=prepped["head_w"])


def _reference_forward(params, x, hx, cx):
    """Pure-JAX f32 reference mirroring the PyTorch forward (for correctness check)."""
    def lin(w, b, v):
        return v @ w.T + b

    H = hx.shape[-1]
    v = x.astype(jnp.float32) / 5.0
    v = jax.nn.relu(lin(params["fc1_w"], params["fc1_b"], v))
    gates = v @ params["w_ih"].T + params["b_ih"] + hx[0] @ params["w_hh"].T + params["b_hh"]
    i_g = jax.nn.sigmoid(gates[:, 0 * H:1 * H])
    f_g = jax.nn.sigmoid(gates[:, 1 * H:2 * H])
    g_g = jnp.tanh(gates[:, 2 * H:3 * H])
    o_g = jax.nn.sigmoid(gates[:, 3 * H:4 * H])
    c_new = f_g * cx[0] + i_g * g_g
    h_new = o_g * jnp.tanh(c_new)
    a = jax.nn.relu(lin(params["a1_w"], params["a1_b"], h_new))
    a = jax.nn.relu(lin(params["a2_w"], params["a2_b"], a))
    logits = lin(params["pol_w"], params["pol_b"], a)
    c = jax.nn.relu(lin(params["c1_w"], params["c1_b"], h_new))
    c = jax.nn.relu(lin(params["c2_w"], params["c2_b"], c))
    value = lin(params["val_w"], params["val_b"], c)[:, 0]
    return logits, value, (h_new[None], c_new[None])


if __name__ == "__main__":
    B = 2
    T = 8
    INPUT_SIZE = 16
    NUM_ACTIONS = 4
    HIDDEN = 32

    key = jax.random.PRNGKey(0)
    k_params, k_x, k_seq = jax.random.split(key, 3)
    params = init_params(k_params, INPUT_SIZE, NUM_ACTIONS, HIDDEN)
    prepped = prepare_params(params)   # one-time transform (outside the per-step jit)

    x = jax.random.normal(k_x, (B, INPUT_SIZE), jnp.float32) * 5.0
    hx = jnp.zeros((1, B, HIDDEN), jnp.float32)
    cx = jnp.zeros((1, B, HIDDEN), jnp.float32)

    # bf16 weight slab (f32 accumulation) -> relaxed tolerance vs. the f32 reference.
    tol = dict(atol=3e-2, rtol=3e-2)

    # ---- single step (matches the PyTorch module's forward) ----
    logits, value, (hx_new, cx_new) = policy_value_forward(prepped, x, hx, cx)
    jax.block_until_ready((logits, value, hx_new, cx_new))

    r_logits, r_value, (r_hx, r_cx) = _reference_forward(params, x, hx, cx)
    assert logits.shape == (B, NUM_ACTIONS) and value.shape == (B,)
    assert hx_new.shape == (1, B, HIDDEN) and cx_new.shape == (1, B, HIDDEN)
    assert jnp.allclose(logits, r_logits, **tol)
    assert jnp.allclose(value, r_value, **tol)
    assert jnp.allclose(hx_new, r_hx, **tol)
    assert jnp.allclose(cx_new, r_cx, **tol)

    # ---- T back-to-back steps in one kernel launch (state resident in VMEM) ----
    xs = jax.random.normal(k_seq, (T, B, INPUT_SIZE), jnp.float32) * 5.0
    logits_seq, values_seq, (hx_T, cx_T) = policy_value_rollout(prepped, xs, hx, cx)
    jax.block_until_ready((logits_seq, values_seq, hx_T, cx_T))
    assert logits_seq.shape == (T, B, NUM_ACTIONS) and values_seq.shape == (T, B)

    rh, rc = hx, cx
    for t in range(T):
        rl, rv, (rh, rc) = _reference_forward(params, xs[t], rh, rc)
        assert jnp.allclose(logits_seq[t], rl, **tol)
        assert jnp.allclose(values_seq[t], rv, **tol)
    assert jnp.allclose(hx_T, rh, **tol)
    assert jnp.allclose(cx_T, rc, **tol)

    print("KERNEL_OK")
</pallas_src>

<mosaic_0001>
module attributes {stable_mosaic.version = 11 : i64} {
  func.func @_pv_kernel(%arg0: i32, %arg1: memref<1x2x16xf32, #tpu.memory_space<vmem>>, %arg2: memref<2x64xf32, #tpu.memory_space<vmem>>, %arg3: memref<256x128xbf16, #tpu.memory_space<vmem>>, %arg4: memref<1x2x128xf32, #tpu.memory_space<vmem>>, %arg5: memref<2x64xf32, #tpu.memory_space<vmem>>) attributes {dimension_semantics = [#tpu.dimension_semantics<arbitrary>], iteration_bounds = array<i64: 1>, scalar_prefetch = 0 : i64, scratch_operands = 0 : i64, tpu.core_type = #tpu.core_type<tc>, window_params = [{transform_indices = @transform_0, window_bounds = array<i64: 1, 2, 16>}, {pipeline_mode = #tpu.pipeline_mode<synchronous>, transform_indices = @transform_1, window_bounds = array<i64: 2, 64>}, {pipeline_mode = #tpu.pipeline_mode<synchronous>, transform_indices = @transform_2, window_bounds = array<i64: 256, 128>}, {transform_indices = @transform_3, window_bounds = array<i64: 1, 2, 128>}, {pipeline_mode = #tpu.pipeline_mode<synchronous>, transform_indices = @transform_4, window_bounds = array<i64: 2, 64>}]} {
    %c0_i32 = arith.constant 0 : i32
    %0 = arith.cmpi eq, %arg0, %c0_i32 : i32
    %1 = arith.extui %0 : i1 to i32
    %c0_i32_0 = arith.constant 0 : i32
    %2 = arith.cmpi ne, %1, %c0_i32_0 : i32
    scf.if %2 {
      %c0_30 = arith.constant 0 : index
      %c0_31 = arith.constant 0 : index
      %69 = vector.load %arg2[%c0_30, %c0_31] : memref<2x64xf32, #tpu.memory_space<vmem>>, vector<2x64xf32>
      %c0_32 = arith.constant 0 : index
      %c0_33 = arith.constant 0 : index
      %70 = vector.load %arg5[%c0_32, %c0_33] : memref<2x64xf32, #tpu.memory_space<vmem>>, vector<2x64xf32>
      tpu.vector_store %arg5[%c0_32, %c0_33], %69 {strides = array<i32>} : memref<2x64xf32, #tpu.memory_space<vmem>>, vector<2x64xf32>,
    } else {
    }
    %c0 = arith.constant 0 : index
    %c0_1 = arith.constant 0 : index
    %c0_2 = arith.constant 0 : index
    %3 = vector.load %arg1[%c0, %c0_1, %c0_2] : memref<1x2x16xf32, #tpu.memory_space<vmem>>, vector<1x2x16xf32>
    %4 = vector.shape_cast %3 : vector<1x2x16xf32> to vector<2x16xf32>
    %5 = arith.truncf %4 : vector<2x16xf32> to vector<2x16xbf16>
    %c0_3 = arith.constant 0 : index
    %c0_4 = arith.constant 0 : index
    %6 = vector.load %arg5[%c0_3, %c0_4] : memref<2x64xf32, #tpu.memory_space<vmem>>, vector<2x32xf32>
    %c0_5 = arith.constant 0 : index
    %c32 = arith.constant 32 : index
    %7 = vector.load %arg5[%c0_5, %c32] : memref<2x64xf32, #tpu.memory_space<vmem>>, vector<2x32xf32>
    %c240 = arith.constant 240 : index
    %c0_6 = arith.constant 0 : index
    %8 = vector.load %arg3[%c240, %c0_6] : memref<256x128xbf16, #tpu.memory_space<vmem>>, vector<16x128xbf16>
    %9 = arith.extf %8 : vector<16x128xbf16> to vector<16x128xf32>
    %10 = vector.extract_strided_slice %9 {offsets = [0, 0], sizes = [1, 32], strides = [1, 1]} : vector<16x128xf32> to vector<1x32xf32>
    %11 = vector.extract_strided_slice %9 {offsets = [1, 0], sizes = [1, 128], strides = [1, 1]} : vector<16x128xf32> to vector<1x128xf32>
    %12 = vector.extract_strided_slice %9 {offsets = [2, 0], sizes = [1, 64], strides = [1, 1]} : vector<16x128xf32> to vector<1x64xf32>
    %13 = vector.extract_strided_slice %9 {offsets = [3, 0], sizes = [1, 64], strides = [1, 1]} : vector<16x128xf32> to vector<1x64xf32>
    %14 = vector.extract_strided_slice %9 {offsets = [4, 0], sizes = [1, 128], strides = [1, 1]} : vector<16x128xf32> to vector<1x128xf32>
    %c0_7 = arith.constant 0 : index
    %c0_8 = arith.constant 0 : index
    %15 = vector.load %arg3[%c0_7, %c0_8] : memref<256x128xbf16, #tpu.memory_space<vmem>>, vector<16x32xbf16>
    %cst = arith.constant dense<0.000000e+00> : vector<2x32xf32>
    %16 = tpu.matmul %5, %15, %cst {dimension_numbers = #tpu.dot_dimension_numbers<[1], [0], [0], [1], [0, 0, 1, 1], [], []>} : vector<2x16xbf16>, vector<16x32xbf16>, vector<2x32xf32> -> vector<2x32xf32>
    %17 = vector.broadcast %10 : vector<1x32xf32> to vector<2x32xf32>
    %18 = arith.addf %16, %17 : vector<2x32xf32>
    %cst_9 = arith.constant 0.000000e+00 : f32
    %19 = vector.broadcast %cst_9 : f32 to vector<2x32xf32>
    %20 = arith.maximumf %18, %19 : vector<2x32xf32>
    %21 = arith.truncf %20 : vector<2x32xf32> to vector<2x32xbf16>
    %c16 = arith.constant 16 : index
    %c0_10 = arith.constant 0 : index
    %22 = vector.load %arg3[%c16, %c0_10] : memref<256x128xbf16, #tpu.memory_space<vmem>>, vector<32x128xbf16>
    %cst_11 = arith.constant dense<0.000000e+00> : vector<2x128xf32>
    %23 = tpu.matmul %21, %22, %cst_11 {dimension_numbers = #tpu.dot_dimension_numbers<[1], [0], [0], [1], [0, 0, 1, 1], [], []>} : vector<2x32xbf16>, vector<32x128xbf16>, vector<2x128xf32> -> vector<2x128xf32>
    %24 = arith.truncf %6 : vector<2x32xf32> to vector<2x32xbf16>
    %c48 = arith.constant 48 : index
    %c0_12 = arith.constant 0 : index
    %25 = vector.load %arg3[%c48, %c0_12] : memref<256x128xbf16, #tpu.memory_space<vmem>>, vector<32x128xbf16>
    %cst_13 = arith.constant dense<0.000000e+00> : vector<2x128xf32>
    %26 = tpu.matmul %24, %25, %cst_13 {dimension_numbers = #tpu.dot_dimension_numbers<[1], [0], [0], [1], [0, 0, 1, 1], [], []>} : vector<2x32xbf16>, vector<32x128xbf16>, vector<2x128xf32> -> vector<2x128xf32>
    %27 = arith.addf %23, %26 : vector<2x128xf32>
    %28 = vector.broadcast %11 : vector<1x128xf32> to vector<2x128xf32>
    %29 = arith.addf %27, %28 : vector<2x128xf32>
    %30 = arith.negf %29 : vector<2x128xf32>
    %31 = math.exp %30 : vector<2x128xf32>
    %cst_14 = arith.constant 1.000000e+00 : f32
    %32 = vector.broadcast %cst_14 : f32 to vector<2x128xf32>
    %33 = arith.addf %32, %31 : vector<2x128xf32>
    %34 = arith.divf %32, %33 : vector<2x128xf32>
    %35 = math.tanh %29 : vector<2x128xf32>
    %36 = vector.extract_strided_slice %34 {offsets = [0, 0], sizes = [2, 32], strides = [1, 1]} : vector<2x128xf32> to vector<2x32xf32>
    %37 = vector.extract_strided_slice %34 {offsets = [0, 32], sizes = [2, 32], strides = [1, 1]} : vector<2x128xf32> to vector<2x32xf32>
    %38 = vector.extract_strided_slice %35 {offsets = [0, 64], sizes = [2, 32], strides = [1, 1]} : vector<2x128xf32> to vector<2x32xf32>
    %39 = vector.extract_strided_slice %34 {offsets = [0, 96], sizes = [2, 32], strides = [1, 1]} : vector<2x128xf32> to vector<2x32xf32>
    %40 = arith.mulf %37, %7 : vector<2x32xf32>
    %41 = arith.mulf %36, %38 : vector<2x32xf32>
    %42 = arith.addf %40, %41 : vector<2x32xf32>
    %43 = math.tanh %42 : vector<2x32xf32>
    %44 = arith.mulf %39, %43 : vector<2x32xf32>
    %c0_15 = arith.constant 0 : index
    %c0_16 = arith.constant 0 : index
    %45 = vector.load %arg5[%c0_15, %c0_16] : memref<2x64xf32, #tpu.memory_space<vmem>>, vector<2x32xf32>
    tpu.vector_store %arg5[%c0_15, %c0_16], %44 {strides = array<i32>} : memref<2x64xf32, #tpu.memory_space<vmem>>, vector<2x32xf32>,
    %c0_17 = arith.constant 0 : index
    %c32_18 = arith.constant 32 : index
    %46 = vector.load %arg5[%c0_17, %c32_18] : memref<2x64xf32, #tpu.memory_space<vmem>>, vector<2x32xf32>
    tpu.vector_store %arg5[%c0_17, %c32_18], %42 {strides = array<i32>} : memref<2x64xf32, #tpu.memory_space<vmem>>, vector<2x32xf32>,
    %47 = arith.truncf %44 : vector<2x32xf32> to vector<2x32xbf16>
    %c80 = arith.constant 80 : index
    %c0_19 = arith.constant 0 : index
    %48 = vector.load %arg3[%c80, %c0_19] : memref<256x128xbf16, #tpu.memory_space<vmem>>, vector<32x64xbf16>
    %cst_20 = arith.constant dense<0.000000e+00> : vector<2x64xf32>
    %49 = tpu.matmul %47, %48, %cst_20 {dimension_numbers = #tpu.dot_dimension_numbers<[1], [0], [0], [1], [0, 0, 1, 1], [], []>} : vector<2x32xbf16>, vector<32x64xbf16>, vector<2x64xf32> -> vector<2x64xf32>
    %50 = vector.broadcast %12 : vector<1x64xf32> to vector<2x64xf32>
    %51 = arith.addf %49, %50 : vector<2x64xf32>
    %cst_21 = arith.constant 0.000000e+00 : f32
    %52 = vector.broadcast %cst_21 : f32 to vector<2x64xf32>
    %53 = arith.maximumf %51, %52 : vector<2x64xf32>
    %54 = arith.truncf %53 : vector<2x64xf32> to vector<2x64xbf16>
    %c112 = arith.constant 112 : index
    %c0_22 = arith.constant 0 : index
    %55 = vector.load %arg3[%c112, %c0_22] : memref<256x128xbf16, #tpu.memory_space<vmem>>, vector<64x64xbf16>
    %cst_23 = arith.constant dense<0.000000e+00> : vector<2x64xf32>
    %56 = tpu.matmul %54, %55, %cst_23 {dimension_numbers = #tpu.dot_dimension_numbers<[1], [0], [0], [1], [0, 0, 1, 1], [], []>} : vector<2x64xbf16>, vector<64x64xbf16>, vector<2x64xf32> -> vector<2x64xf32>
    %57 = vector.broadcast %13 : vector<1x64xf32> to vector<2x64xf32>
    %58 = arith.addf %56, %57 : vector<2x64xf32>
    %cst_24 = arith.constant 0.000000e+00 : f32
    %59 = vector.broadcast %cst_24 : f32 to vector<2x64xf32>
    %60 = arith.maximumf %58, %59 : vector<2x64xf32>
    %61 = arith.truncf %60 : vector<2x64xf32> to vector<2x64xbf16>
    %c176 = arith.constant 176 : index
    %c0_25 = arith.constant 0 : index
    %62 = vector.load %arg3[%c176, %c0_25] : memref<256x128xbf16, #tpu.memory_space<vmem>>, vector<64x128xbf16>
    %cst_26 = arith.constant dense<0.000000e+00> : vector<2x128xf32>
    %63 = tpu.matmul %61, %62, %cst_26 {dimension_numbers = #tpu.dot_dimension_numbers<[1], [0], [0], [1], [0, 0, 1, 1], [], []>} : vector<2x64xbf16>, vector<64x128xbf16>, vector<2x128xf32> -> vector<2x128xf32>
    %64 = vector.broadcast %14 : vector<1x128xf32> to vector<2x128xf32>
    %65 = arith.addf %63, %64 : vector<2x128xf32>
    %c0_27 = arith.constant 0 : index
    %c0_28 = arith.constant 0 : index
    %c0_29 = arith.constant 0 : index
    %66 = vector.load %arg4[%c0_27, %c0_28, %c0_29] : memref<1x2x128xf32, #tpu.memory_space<vmem>>, vector<1x2x128xf32>
    %67 = vector.shape_cast %66 : vector<1x2x128xf32> to vector<2x128xf32>
    %68 = vector.shape_cast %65 : vector<2x128xf32> to vector<1x2x128xf32>
    tpu.vector_store %arg4[%c0_27, %c0_28, %c0_29], %68 {strides = array<i32>} : memref<1x2x128xf32, #tpu.memory_space<vmem>>, vector<1x2x128xf32>,
    return
  }
  func.func @transform_0(%arg0: i32) -> (i32, i32, i32) {
    %c0_i32 = arith.constant 0 : i32
    %c0_i32_0 = arith.constant 0 : i32
    %c0_i32_1 = arith.constant 0 : i32
    return %arg0, %c0_i32, %c0_i32_0 : i32, i32, i32
  }
  func.func @transform_1(%arg0: i32) -> (i32, i32) {
    %c0_i32 = arith.constant 0 : i32
    %c0_i32_0 = arith.constant 0 : i32
    %c0_i32_1 = arith.constant 0 : i32
    return %c0_i32, %c0_i32_0 : i32, i32
  }
  func.func @transform_2(%arg0: i32) -> (i32, i32) {
    %c0_i32 = arith.constant 0 : i32
    %c0_i32_0 = arith.constant 0 : i32
    %c0_i32_1 = arith.constant 0 : i32
    return %c0_i32, %c0_i32_0 : i32, i32
  }
  func.func @transform_3(%arg0: i32) -> (i32, i32, i32) {
    %c0_i32 = arith.constant 0 : i32
    %c0_i32_0 = arith.constant 0 : i32
    %c0_i32_1 = arith.constant 0 : i32
    return %arg0, %c0_i32, %c0_i32_0 : i32, i32, i32
  }
  func.func @transform_4(%arg0: i32) -> (i32, i32) {
    %c0_i32 = arith.constant 0 : i32
    %c0_i32_0 = arith.constant 0 : i32
    %c0_i32_1 = arith.constant 0 : i32
    return %c0_i32, %c0_i32_0 : i32, i32
  }
}

</mosaic_0001>

<bundles_post_ra>
// kernel: _forward_impl.1
= control target key start
LH: loop header
LB: loop body
LE: loop exit
PB: predicated region body
PF: predicated region fallthrough
CT: control target
= control target key end

     0   :  { %10 = vsyncpa [#allocation3], 0  ;;  %s456_s18 = smov [#allocation2]   ;;  %s457_s20 = smov 64   ;;  %s523_s0 = inlined_call_operand.vmem [shape: f32[1,2,16], index: 0, kind: input, shape index: {}]   ;;  %s524_s1 = inlined_call_operand.vmem [shape: f32[2,64], index: 1, kind: input, shape index: {}]   ;;  %s525_s2 = inlined_call_operand.hbm [shape: bf16[256,128], index: 2, kind: input, shape index: {}]   ;;  %s526_s3 = inlined_call_operand.vmem [shape: f32[1,2,128], index: 3, kind: output, shape index: {0}]   ;;  %s527_s4 = inlined_call_operand.vmem [shape: f32[2,64], index: 4, kind: output, shape index: {1}]  }
   0x1   :  { %s19_s17 = sshll.u32 %s525_s2, 4  ;;  %s21_s19 = sshll.u32 %s456_s18, 4  ;;  %s20_s17 = int_to_ptr.hbm [resolvable:$true] %s19_s17  ;;  %s22_s19 = int_to_ptr.vmem [resolvable:$true] %s21_s19 }
   0x2   :  { %s458_s21 = smov 4  }
   0x3   :  { %27 = dma.hbm_to_vmem [thread:$0]  %s20_s17, 2048, %s22_s19, [#allocation3], %s457_s20, %s457_s20, %s458_s21  }
   0x4   :  { %454 = dma.done.wait [#allocation3], 2048  }
   0x5   :  { %455 = vsyncadd [#allocation3], 4294965248  ;;  %v403_v0 = vld [vmem:[#allocation2] sm:$0xff]  ;;  %vm54_vm0 = vcmask 130048   ;;  %vm38_vm1 = vcmask 517120   ;;  %v405_v5 = vld [vmem:[#allocation2 + $0x10] sm:$0xff] }
   0x6   :  { %v40_v1 = vld [vmem:[%s523_s0] sm:$0x3]  ;;  %65 = vmatpush.bf16.msra.mxu0 %v403_v0  ;;  %132 = vmatpush.bf16.msra.mxu2 %v405_v5  ;;  %v406_v6 = vld [vmem:[#allocation2 + $0x18] sm:$0xff]  ;;  %v404_v7 = vld [vmem:[#allocation2 + $0x8] sm:$0xff]  ;;  %vm94_vm2 = vcmask 261120   ;;  %vm182_vm7 = vcmask 254976  }
   0x7   :  { %v407_v2 = vld [vmem:[#allocation2 + $0x20] sm:$0xff]  ;;  %v41_v3 = vpack.c.bf16 %v40_v1, %v40_v1  ;;  %v43_v10 = vld [vmem:[#allocation2 + $0x78] sm:$0xf]  ;;  %v409_v48 = vld [vmem:[#allocation2 + $0x30] sm:$0xff]  ;;  %vm184_vm8 = vcmask 517376   ;;  %vm258_vm9 = vcmask 523264  }
   0x8   :  { %104 = vmatpush.bf16.msra.mxu1 %v407_v2  ;;  %v37_v4 = vld [vmem:[%s524_s1] sm:$0x3]  ;;  %v503_v11 = vunpack.c.l.bf16 %v43_v10  ;;  %s459_s1 = smov 32   ;;  %216 = vmatpush.bf16.msra.mxu3 %v409_v48  ;;  %v408_v49 = vld [vmem:[#allocation2 + $0x28] sm:$0xff]  ;;  %v413_v50 = vld [vmem:[#allocation2 + $0x50] sm:$0xff] }
   0x9   :  { %340 = vmatmul.msk.bf16.vlgmr.msra.gmra.mxu0 %vm54_vm0, %v41_v3  ;;  %39 = vst.msk [vmem:[%s527_s4] sm:$0x3] %vm38_vm1, %v37_v4  ;;  %v412_v51 = vld [vmem:[#allocation2 + $0x48] sm:$0xff]  ;;  %v411_v53 = vld [vmem:[#allocation2 + $0x40] sm:$0xff]  ;;  %v410_v55 = vld [vmem:[#allocation2 + $0x38] sm:$0xff] }
   0xa   :  { %133 = vmatpush.bf16.msra.mxu2 %v404_v7  ;;  %v47_v12 = vperm.slane %v503_v11, 0  ;;  %v139_v20 = vperm.slane %v503_v11, 1  ;;  %266 = vmatpush.bf16.msrb.mxu0 %v413_v50  ;;  %v417_v56 = vld [vmem:[#allocation2 + $0x70] sm:$0xff]  ;;  %v416_v57 = vld [vmem:[#allocation2 + $0x68] sm:$0xff]  ;;  %v415_v58 = vld [vmem:[#allocation2 + $0x60] sm:$0xff]  ;;  %v191_v59 = vperm.slane %v503_v11, 2 }
   0xb   :  { %v414_v1 = vld [vmem:[#allocation2 + $0x58] sm:$0xff]  ;;  %v233_v2 = vperm.slane %v503_v11, 3 }
   0xc   :  { %105 = vmatpush.bf16.msra.mxu1 %v406_v6  ;;  %217 = vmatpush.bf16.msra.mxu3 %v408_v49 }
   0xe   :  { %267 = vmatpush.bf16.msrb.mxu0 %v412_v51 }
  0x10   :  { %v42_v8 = vld [vmem:[%s527_s4] sm:$0x3]  ;;  %317 = vmatpush.bf16.msrb.mxu1 %v417_v56 }
  0x11   :  { %v77_v9 = vpack.c.bf16 %v42_v8, %v42_v8 }
  0x12   :  { %268 = vmatpush.bf16.msrb.mxu0 %v411_v53 }
  0x13   :  { %349 = vmatmul.msk.bf16.vlgmr.msra.gmra.mxu1 %vm94_vm2, %v77_v9 }
  0x14   :  { %318 = vmatpush.bf16.msrb.mxu1 %v416_v57 }
  0x16   :  { %269 = vmatpush.bf16.msrb.mxu0 %v410_v55 }
  0x18   :  { %319 = vmatpush.bf16.msrb.mxu1 %v415_v58 }
  0x1c   :  { %320 = vmatpush.bf16.msrb.mxu1 %v414_v1 }
  0x86   :  { %v67_v13 = vpop.f32.mrf.mxu0 }
  0x87   :  { %v68_v14 = vadd.f32 %v67_v13, %v47_v12 }
  0x89   :  { %v71_v15 = vmax.f32 %v68_v14, 0.0 }
  0x8b   :  { %v72_v16 = vpack.c.bf16 %v71_v15, %v71_v15 }
  0x8d   :  { %358 = vmatmul.msk.bf16.vlgmr.msra.gmra.mxu2 %vm94_vm2, %v72_v16 }
  0x8e   :  { %v69_v17 = vpop.f32.mrf.mxu0 }
  0x90   :  { %v107_v18 = vpop.f32.mrf.mxu1 }
  0x98   :  { %v109_v19 = vpop.f32.mrf.mxu1 }
 0x110   :  { %v135_v21 = vpop.f32.mrf.mxu2 }
 0x111   :  { %v136_v22 = vadd.f32 %v135_v21, %v107_v18 }
 0x113   :  { %v140_v23 = vadd.f32 %v139_v20, %v136_v22 }
 0x115   :  { %422 = vtanh.f32 %v140_v23  ;;  %v359_v26 = vmul.f32 -1.442695, %v140_v23 }
 0x117   :  { %424 = vpow2.f32 %v359_v26 }
 0x118   :  { %v137_v24 = vpop.f32.mrf.mxu2 }
 0x11b   :  { %v423_v25 = vpop.eup %422 }
 0x11c   :  { %163 = vrot.lane.b32.xlu0 %v423_v25, %s457_s20 }
 0x11d   :  { %v425_v27 = vpop.eup %424 }
 0x11e   :  { %v144_v28 = vadd.f32 1.0, %v425_v27 }
 0x120   :  { %426 = vrcp.f32 %v144_v28  ;;  %v156_v34 = vand.u32 2147483648, %v144_v28  ;;  %vm150_vm4 = vweird.f32 %v144_v28  ;;  %v154_v35 = vand.u32 2147483647, %v144_v28 }
 0x122   :  { %v157_v37 = vor.u32 1.1754944e-38, %v156_v34  ;;  %vm155_vm6 = vcmp.eq.f32.partialorder %v154_v35, 8.507059e+37 }
 0x126   :  { %v427_v29 = vpop.eup %426 }
 0x127   :  { %v146_v30 = vmul.f32 %v427_v29, %v144_v28  ;;  %vm151_vm3 = vweird.f32 %v427_v29 }
 0x128   :  { %vm152_vm5 = vmor %vm150_vm4, %vm151_vm3 }
 0x129   :  { %v147_v31 = vsub.f32 1.0, %v146_v30 }
 0x12b   :  { %v148_v32 = vmul.f32 %v427_v29, %v147_v31 }
 0x12d   :  { %v149_v33 = vadd.f32 %v427_v29, %v148_v32 }
 0x12f   :  { %v153_v36 = vsel %vm152_vm5, %v427_v29, %v149_v33 }
 0x130   :  { %v158_v39 = vsel %vm155_vm6, %v157_v37, %v153_v36 }
 0x131   :  { %v161_v41 = vmul.f32 %v158_v39, %v42_v8  ;;  %v285_v8 = vperm.slane %v503_v11, 4 }
 0x18e   :  { %v164_v38 = vpop.permute.xlu0 %163 }
 0x18f   :  { %v166_v40 = vmul.f32 %v164_v38, %v158_v39 }
 0x191   :  { %168 = vrot.lane.b32.xlu0 %v166_v40, %s459_s1 }
 0x203   :  { %v169_v42 = vpop.permute.xlu0 %168 }
 0x204   :  { %v171_v43 = vadd.f32 %v169_v42, %v161_v41 }
 0x206   :  { %428 = vtanh.f32 %v171_v43 }
 0x20c   :  { %v429_v44 = vpop.eup %428 }
 0x20d   :  { %174 = vrot.lane.b32.xlu1 %v429_v44, %s457_s20 }
 0x27f   :  { %v175_v45 = vpop.permute.xlu1 %174 }
 0x280   :  { %v177_v46 = vmul.f32 %v175_v45, %v158_v39 }
 0x282   :  { %v186_v47 = vpack.c.bf16 %v177_v46, %v177_v46  ;;  %179 = vrot.lane.b32.xlu2 %v177_v46, %s459_s1 }
 0x284   :  { %193 = vrot.lane.b32.xlu1 %v186_v47, %s459_s1 }
 0x2dc   :  { %v180_v52 = vpop.permute.xlu2 %179 }
 0x2dd   :  { %183 = vst.msk [vmem:[%s527_s4] sm:$0x3] %vm182_vm7, %v180_v52 }
 0x2de   :  { %185 = vst.msk [vmem:[%s527_s4] sm:$0x3] %vm184_vm8, %v171_v43 }
 0x2f6   :  { %v194_v54 = vpop.permute.xlu1 %193 }
 0x2f7   :  { %368 = vmatmul.msk.bf16.vlgmr.msra.gmra.mxu3 %vm94_vm2, %v194_v54 }
 0x37a   :  { %v219_v60 = vpop.f32.mrf.mxu3 }
 0x37b   :  { %v220_v61 = vadd.f32 %v219_v60, %v191_v59 }
 0x37d   :  { %v223_v62 = vmax.f32 %v220_v61, 0.0 }
 0x37f   :  { %v224_v63 = vpack.c.bf16 %v223_v62, %v223_v62 }
 0x381   :  { %385 = vmatmul.msk.bf16.vlgmr.msrb.gmra.mxu0 %vm258_vm9, %v224_v63 }
 0x382   :  { %v221_v0 = vpop.f32.mrf.mxu3 }
 0x3fe   :  { %v271_v3 = vpop.f32.mrf.mxu0 }
 0x3ff   :  { %v272_v4 = vadd.f32 %v271_v3, %v233_v2 }
 0x401   :  { %v275_v5 = vmax.f32 %v272_v4, 0.0 }
 0x403   :  { %v276_v6 = vpack.c.bf16 %v275_v5, %v275_v5 }
 0x405   :  { %402 = vmatmul.msk.bf16.vlgmr.msrb.gmra.mxu1 %vm258_vm9, %v276_v6 }
 0x406   :  { %v273_v7 = vpop.f32.mrf.mxu0 }
 0x482   :  { %v322_v9 = vpop.f32.mrf.mxu1 }
 0x483   :  { %v323_v10 = vadd.f32 %v322_v9, %v285_v8 }
 0x485   :  { %326 = vst [vmem:[%s526_s3] sm:$0x3] %v323_v10 }
 0x48a   :  { %v324_v12 = vpop.f32.mrf.mxu1 }
 0x48b   :  { %335 = vsyncpa [#allocation3], 1 }

</bundles_post_ra>
